<compile_context>
chip_gen: v7x
topology: tpu7x:2x2x1
jax: 0.10.0
libtpu: 0.0.40
codegen_flags: <defaults>
</compile_context>

<pallas_src>
import functools
import math

import jax
import jax.numpy as jnp
import numpy as np
from jax.experimental import pallas as pl
from jax.experimental.pallas import tpu as pltpu

SMOOTH_K = 32.0
NCOLS = 34          # columns in the per-triangle constant table
R = 8               # sublanes per vreg working slab


def _tri_kernel(tri_ref, x_ref, y_ref, z_ref, o_ref, *, n, k, block_rows):
    """One grid step: (block_rows, lanes) points vs all n triangles.

    tri_ref : (n*NCOLS,) f32 SMEM  per-triangle constants (scalar reads only)
    x/y/z   : (block_rows, lanes) f32 VMEM point coordinates
    o_ref   : (block_rows, lanes) f32 smooth-min distance per point
    """
    n_sub = block_rows // R
    scale = math.exp(0.04 * k)          # folds the "- 0.04" offset out of the loop
    neg_inv_k = -1.0 / k

    @pl.loop(0, n_sub)
    def _(s):
        r0 = pl.multiple_of(s * R, R)
        # Hoisted out of the triangle loop: loaded once per (8, lanes) sub-slab.
        px = x_ref[pl.ds(r0, R), :]
        py = y_ref[pl.ds(r0, R), :]
        pz = z_ref[pl.ds(r0, R), :]

        def tri(t, acc):
            base = t * NCOLS

            def s_(j):
                return tri_ref[base + j]        # scalar load from SMEM

            ax, ay, az = s_(0), s_(1), s_(2)        # vertex a
            bx, by, bz = s_(3), s_(4), s_(5)        # vertex b
            cx, cy, cz = s_(6), s_(7), s_(8)        # vertex c
            bax, bay, baz = s_(9), s_(10), s_(11)   # ba = b - a
            cbx, cby, cbz = s_(12), s_(13), s_(14)  # cb = c - b
            acx, acy, acz = s_(15), s_(16), s_(17)  # ac = a - c
            nx, ny, nz = s_(18), s_(19), s_(20)     # nor = cross(ba, ac)
            c1x, c1y, c1z = s_(21), s_(22), s_(23)  # cross(ba, nor)
            c2x, c2y, c2z = s_(24), s_(25), s_(26)  # cross(cb, nor)
            c3x, c3y, c3z = s_(27), s_(28), s_(29)  # cross(ac, nor)
            r_ba, r_cb, r_ac, r_nor = s_(30), s_(31), s_(32), s_(33)

            # --- vertex a / edge ba ------------------------------------
            pax, pay, paz = px - ax, py - ay, pz - az
            d1 = c1x * pax + c1y * pay + c1z * paz
            tt = jnp.clip((bax * pax + bay * pay + baz * paz) * r_ba, 0.0, 1.0)
            dx, dy, dz = bax * tt - pax, bay * tt - pay, baz * tt - paz
            dmin = dx * dx + dy * dy + dz * dz
            dn = nx * pax + ny * pay + nz * paz
            opp = dn * dn * r_nor

            # --- vertex b / edge cb ------------------------------------
            pbx, pby, pbz = px - bx, py - by, pz - bz
            d2 = c2x * pbx + c2y * pby + c2z * pbz
            tt = jnp.clip((cbx * pbx + cby * pby + cbz * pbz) * r_cb, 0.0, 1.0)
            dx, dy, dz = cbx * tt - pbx, cby * tt - pby, cbz * tt - pbz
            dmin = jnp.minimum(dmin, dx * dx + dy * dy + dz * dz)

            # --- vertex c / edge ac ------------------------------------
            pcx, pcy, pcz = px - cx, py - cy, pz - cz
            d3 = c3x * pcx + c3y * pcy + c3z * pcz
            tt = jnp.clip((acx * pcx + acy * pcy + acz * pcz) * r_ac, 0.0, 1.0)
            dx, dy, dz = acx * tt - pcx, acy * tt - pcy, acz * tt - pcz
            dmin = jnp.minimum(dmin, dx * dx + dy * dy + dz * dz)

            # Comparison form of "sign(d1)+sign(d2)+sign(d3) < 2" (differs only
            # on measure-zero configurations where a plane dot is exactly 0).
            outside = (d1 < 0.0) | (d2 < 0.0) | (d3 < 0.0)
            dsq = jnp.where(outside, dmin, opp)
            return acc + jnp.exp(-k * jnp.sqrt(jnp.maximum(dsq, 1e-8)))

        acc = jax.lax.fori_loop(0, n, tri, jnp.zeros_like(px))
        o_ref[pl.ds(r0, R), :] = neg_inv_k * jnp.log(
            jnp.maximum(scale * acc, 1e-6))


def _triangle_constants(points):
    """points: (n, 3, 3) -> flat (n*NCOLS,) f32 constant table (for SMEM)."""
    pts = points.astype(jnp.float32)
    a, b, c = pts[:, 0, :], pts[:, 1, :], pts[:, 2, :]
    ba = b - a
    cb = c - b
    ac = a - c
    nor = jnp.cross(ba, ac)
    c1 = jnp.cross(ba, nor)
    c2 = jnp.cross(cb, nor)
    c3 = jnp.cross(ac, nor)

    def rcp2(v):  # reciprocal of squared length (no per-point divide in kernel)
        return 1.0 / jnp.sum(v * v, axis=-1, keepdims=True)

    tbl = jnp.concatenate(
        [a, b, c, ba, cb, ac, nor, c1, c2, c3,
         rcp2(ba), rcp2(cb), rcp2(ac), rcp2(nor)],
        axis=-1).astype(jnp.float32)          # (n, 34)
    return tbl.reshape(-1)                    # flat 1-D -> avoids SMEM 2-D padding


def _choose_layout(n_points, n_tri):
    """Pick (lanes, padded_rows, rows_per_block); all Python ints (trace time)."""
    # Small batches: 128-lane slab (less padded compute); big batches: 512 lanes.
    lanes = 128 if n_points <= 4096 else 512
    rows_needed = max(8, ((-(-n_points // lanes)) + 7) // 8 * 8)
    if rows_needed == 8:
        return lanes, 8, 8                    # single step; nothing to shard
    # Tiny cost model: padded-row VALU cost + ~600 cycles per grid step.
    # Require >= 2 steps so v7x's second TensorCore gets work.
    row_cost = max(1, n_tri * lanes * 110 // 4096)   # ~VPU cycles per padded row
    best = None
    for br in range(8, 72, 8):                # candidate rows-per-block, <= 64
        steps = -(-rows_needed // br)
        if steps < 2:
            continue
        cost = steps * (br * row_cost + 600)
        if best is None or cost < best[0]:
            best = (cost, br, steps)
    _, br, steps = best
    return lanes, br * steps, br


@jax.jit
def triangles_forward(p, points):
    """Pallas equivalent of Triangles.forward. p: (..., 3) -> (..., 1)."""
    orig_batch = p.shape[:-1]
    P = 1
    for s in orig_batch:
        P *= int(s)

    pts = p.reshape(P, 3).astype(jnp.float32)
    tri_flat = _triangle_constants(points)            # (n*34,)
    n = points.shape[0]

    lanes, rows, block_rows = _choose_layout(P, n)
    P_pad = rows * lanes
    n_tiles = rows // block_rows

    coords = jnp.zeros((3, P_pad), jnp.float32).at[:, :P].set(pts.T)
    xs = coords[0].reshape(rows, lanes)
    ys = coords[1].reshape(rows, lanes)
    zs = coords[2].reshape(rows, lanes)

    out = pl.pallas_call(
        functools.partial(_tri_kernel, n=n, k=SMOOTH_K, block_rows=block_rows),
        out_shape=jax.ShapeDtypeStruct((rows, lanes), jnp.float32),
        grid=(n_tiles,),
        in_specs=[
            pl.BlockSpec(memory_space=pltpu.MemorySpace.SMEM),  # constant table
            pl.BlockSpec((block_rows, lanes), lambda i: (i, 0)),
            pl.BlockSpec((block_rows, lanes), lambda i: (i, 0)),
            pl.BlockSpec((block_rows, lanes), lambda i: (i, 0)),
        ],
        out_specs=pl.BlockSpec((block_rows, lanes), lambda i: (i, 0)),
        compiler_params=pltpu.CompilerParams(
            dimension_semantics=("parallel",)),
    )(tri_flat, xs, ys, zs)

    return out.reshape(-1)[:P].reshape(orig_batch + (1,))


def triangles_reference(p, points, k=SMOOTH_K):
    """Pure-JAX mirror of the PyTorch forward (for verification)."""
    points = points.astype(jnp.float32)
    pv = p.reshape(-1, 1, 1, 3).astype(jnp.float32) - points    # (P, n, 3, 3)
    pa, pb, pc = pv[:, :, 0:1], pv[:, :, 1:2], pv[:, :, 2:3]
    edges = points - jnp.roll(points, 1, axis=-2)
    ac, ba, cb = edges[:, 0:1], edges[:, 1:2], edges[:, 2:3]
    nor = jnp.cross(ba, ac)

    def dot(a, b, keepdims=False):
        return jnp.sum(a * b, -1, keepdims=keepdims)

    sidedness = (jnp.sign(dot(jnp.cross(ba, nor), pa))
                 + jnp.sign(dot(jnp.cross(cb, nor), pb))
                 + jnp.sign(dot(jnp.cross(ac, nor), pc)))

    def ed(e, q):
        t = jnp.clip(dot(e, q, True) / dot(e, e, True), 0.0, 1.0)
        d = e * t - q
        return jnp.sum(d * d, -1)

    same = jnp.minimum(jnp.minimum(ed(ba, pa), ed(cb, pb)), ed(ac, pc))
    opp = dot(nor, pa) ** 2 / dot(nor, nor)
    out = jnp.sqrt(jnp.maximum(jnp.where(sidedness < 2, same, opp), 1e-8))
    out = out.squeeze(-1) - 0.04                                # (P, n)
    sm = -jnp.log(jnp.maximum(jnp.sum(jnp.exp(-k * out), -1), 1e-6)) / k
    return sm.reshape(p.shape[:-1] + (1,))


if __name__ == "__main__":
    key = jax.random.PRNGKey(0)
    k_pts, k_q = jax.random.split(key)

    n_tri = 32
    # nn.Parameter(0.3 * torch.rand(n, 3, 3) - 0.15), deterministic analogue:
    points = 0.3 * jax.random.uniform(k_pts, (n_tri, 3, 3), jnp.float32) - 0.15
    # query points, small shape: (2, 128, 3)
    p = 0.5 * jax.random.normal(k_q, (2, 128, 3), jnp.float32)

    out = triangles_forward(p, points)
    out = jax.block_until_ready(out)

    assert out.shape == (2, 128, 1), out.shape
    ref = triangles_reference(p, points)
    np.testing.assert_allclose(np.asarray(out), np.asarray(ref),
                               rtol=1e-4, atol=1e-5)
    print("KERNEL_OK")
</pallas_src>

<mosaic_0001>
module attributes {stable_mosaic.version = 11 : i64} {
  func.func @_tri_kernel(%arg0: i32, %arg1: memref<1088xf32, #tpu.memory_space<smem>>, %arg2: memref<8x128xf32, #tpu.memory_space<vmem>>, %arg3: memref<8x128xf32, #tpu.memory_space<vmem>>, %arg4: memref<8x128xf32, #tpu.memory_space<vmem>>, %arg5: memref<8x128xf32, #tpu.memory_space<vmem>>) attributes {dimension_semantics = [#tpu.dimension_semantics<parallel>], iteration_bounds = array<i64: 1>, scalar_prefetch = 0 : i64, scratch_operands = 0 : i64, tpu.core_type = #tpu.core_type<tc>, window_params = [{transform_indices = @transform_0, window_bounds = array<i64: 1088>}, {transform_indices = @transform_1, window_bounds = array<i64: 8, 128>}, {transform_indices = @transform_2, window_bounds = array<i64: 8, 128>}, {transform_indices = @transform_3, window_bounds = array<i64: 8, 128>}, {transform_indices = @transform_4, window_bounds = array<i64: 8, 128>}]} {
    %c0_i32 = arith.constant 0 : i32
    %c1_i32 = arith.constant 1 : i32
    %0 = arith.muli %c0_i32, %c1_i32 : i32
    %c0_i32_0 = arith.constant 0 : i32
    %1 = arith.addi %c0_i32_0, %0 : i32
    %c8_i32 = arith.constant 8 : i32
    %2 = arith.muli %1, %c8_i32 : i32
    %3 = tpu.assume_multiple %2, 8 : i32
    %4 = arith.index_cast %3 : i32 to index
    %c0 = arith.constant 0 : index
    %5 = vector.load %arg2[%4, %c0] : memref<8x128xf32, #tpu.memory_space<vmem>>, vector<8x128xf32>
    %6 = arith.index_cast %3 : i32 to index
    %c0_1 = arith.constant 0 : index
    %7 = vector.load %arg3[%6, %c0_1] : memref<8x128xf32, #tpu.memory_space<vmem>>, vector<8x128xf32>
    %8 = arith.index_cast %3 : i32 to index
    %c0_2 = arith.constant 0 : index
    %9 = vector.load %arg4[%8, %c0_2] : memref<8x128xf32, #tpu.memory_space<vmem>>, vector<8x128xf32>
    %cst = arith.constant 0.000000e+00 : f32
    %10 = vector.broadcast %cst : f32 to vector<8x128xf32>
    %c0_i32_3 = arith.constant 0 : i32
    %c32_i32 = arith.constant 32 : i32
    %11 = arith.addi %c0_i32_3, %c32_i32 : i32
    %c1_i32_4 = arith.constant 1 : i32
    %12 = scf.for %arg6 = %c0_i32_3 to %11 step %c1_i32_4 iter_args(%arg7 = %10) -> (vector<8x128xf32>)  : i32 {
      %c34_i32 = arith.constant 34 : i32
      %22 = arith.muli %arg6, %c34_i32 : i32
      %c0_i32_11 = arith.constant 0 : i32
      %23 = arith.addi %22, %c0_i32_11 : i32
      %24 = arith.index_cast %23 : i32 to index
      %25 = memref.load %arg1[%24] : memref<1088xf32, #tpu.memory_space<smem>>
      %c1_i32_12 = arith.constant 1 : i32
      %26 = arith.addi %22, %c1_i32_12 : i32
      %27 = arith.index_cast %26 : i32 to index
      %28 = memref.load %arg1[%27] : memref<1088xf32, #tpu.memory_space<smem>>
      %c2_i32 = arith.constant 2 : i32
      %29 = arith.addi %22, %c2_i32 : i32
      %30 = arith.index_cast %29 : i32 to index
      %31 = memref.load %arg1[%30] : memref<1088xf32, #tpu.memory_space<smem>>
      %c3_i32 = arith.constant 3 : i32
      %32 = arith.addi %22, %c3_i32 : i32
      %33 = arith.index_cast %32 : i32 to index
      %34 = memref.load %arg1[%33] : memref<1088xf32, #tpu.memory_space<smem>>
      %c4_i32 = arith.constant 4 : i32
      %35 = arith.addi %22, %c4_i32 : i32
      %36 = arith.index_cast %35 : i32 to index
      %37 = memref.load %arg1[%36] : memref<1088xf32, #tpu.memory_space<smem>>
      %c5_i32 = arith.constant 5 : i32
      %38 = arith.addi %22, %c5_i32 : i32
      %39 = arith.index_cast %38 : i32 to index
      %40 = memref.load %arg1[%39] : memref<1088xf32, #tpu.memory_space<smem>>
      %c6_i32 = arith.constant 6 : i32
      %41 = arith.addi %22, %c6_i32 : i32
      %42 = arith.index_cast %41 : i32 to index
      %43 = memref.load %arg1[%42] : memref<1088xf32, #tpu.memory_space<smem>>
      %c7_i32 = arith.constant 7 : i32
      %44 = arith.addi %22, %c7_i32 : i32
      %45 = arith.index_cast %44 : i32 to index
      %46 = memref.load %arg1[%45] : memref<1088xf32, #tpu.memory_space<smem>>
      %c8_i32_13 = arith.constant 8 : i32
      %47 = arith.addi %22, %c8_i32_13 : i32
      %48 = arith.index_cast %47 : i32 to index
      %49 = memref.load %arg1[%48] : memref<1088xf32, #tpu.memory_space<smem>>
      %c9_i32 = arith.constant 9 : i32
      %50 = arith.addi %22, %c9_i32 : i32
      %51 = arith.index_cast %50 : i32 to index
      %52 = memref.load %arg1[%51] : memref<1088xf32, #tpu.memory_space<smem>>
      %c10_i32 = arith.constant 10 : i32
      %53 = arith.addi %22, %c10_i32 : i32
      %54 = arith.index_cast %53 : i32 to index
      %55 = memref.load %arg1[%54] : memref<1088xf32, #tpu.memory_space<smem>>
      %c11_i32 = arith.constant 11 : i32
      %56 = arith.addi %22, %c11_i32 : i32
      %57 = arith.index_cast %56 : i32 to index
      %58 = memref.load %arg1[%57] : memref<1088xf32, #tpu.memory_space<smem>>
      %c12_i32 = arith.constant 12 : i32
      %59 = arith.addi %22, %c12_i32 : i32
      %60 = arith.index_cast %59 : i32 to index
      %61 = memref.load %arg1[%60] : memref<1088xf32, #tpu.memory_space<smem>>
      %c13_i32 = arith.constant 13 : i32
      %62 = arith.addi %22, %c13_i32 : i32
      %63 = arith.index_cast %62 : i32 to index
      %64 = memref.load %arg1[%63] : memref<1088xf32, #tpu.memory_space<smem>>
      %c14_i32 = arith.constant 14 : i32
      %65 = arith.addi %22, %c14_i32 : i32
      %66 = arith.index_cast %65 : i32 to index
      %67 = memref.load %arg1[%66] : memref<1088xf32, #tpu.memory_space<smem>>
      %c15_i32 = arith.constant 15 : i32
      %68 = arith.addi %22, %c15_i32 : i32
      %69 = arith.index_cast %68 : i32 to index
      %70 = memref.load %arg1[%69] : memref<1088xf32, #tpu.memory_space<smem>>
      %c16_i32 = arith.constant 16 : i32
      %71 = arith.addi %22, %c16_i32 : i32
      %72 = arith.index_cast %71 : i32 to index
      %73 = memref.load %arg1[%72] : memref<1088xf32, #tpu.memory_space<smem>>
      %c17_i32 = arith.constant 17 : i32
      %74 = arith.addi %22, %c17_i32 : i32
      %75 = arith.index_cast %74 : i32 to index
      %76 = memref.load %arg1[%75] : memref<1088xf32, #tpu.memory_space<smem>>
      %c18_i32 = arith.constant 18 : i32
      %77 = arith.addi %22, %c18_i32 : i32
      %78 = arith.index_cast %77 : i32 to index
      %79 = memref.load %arg1[%78] : memref<1088xf32, #tpu.memory_space<smem>>
      %c19_i32 = arith.constant 19 : i32
      %80 = arith.addi %22, %c19_i32 : i32
      %81 = arith.index_cast %80 : i32 to index
      %82 = memref.load %arg1[%81] : memref<1088xf32, #tpu.memory_space<smem>>
      %c20_i32 = arith.constant 20 : i32
      %83 = arith.addi %22, %c20_i32 : i32
      %84 = arith.index_cast %83 : i32 to index
      %85 = memref.load %arg1[%84] : memref<1088xf32, #tpu.memory_space<smem>>
      %c21_i32 = arith.constant 21 : i32
      %86 = arith.addi %22, %c21_i32 : i32
      %87 = arith.index_cast %86 : i32 to index
      %88 = memref.load %arg1[%87] : memref<1088xf32, #tpu.memory_space<smem>>
      %c22_i32 = arith.constant 22 : i32
      %89 = arith.addi %22, %c22_i32 : i32
      %90 = arith.index_cast %89 : i32 to index
      %91 = memref.load %arg1[%90] : memref<1088xf32, #tpu.memory_space<smem>>
      %c23_i32 = arith.constant 23 : i32
      %92 = arith.addi %22, %c23_i32 : i32
      %93 = arith.index_cast %92 : i32 to index
      %94 = memref.load %arg1[%93] : memref<1088xf32, #tpu.memory_space<smem>>
      %c24_i32 = arith.constant 24 : i32
      %95 = arith.addi %22, %c24_i32 : i32
      %96 = arith.index_cast %95 : i32 to index
      %97 = memref.load %arg1[%96] : memref<1088xf32, #tpu.memory_space<smem>>
      %c25_i32 = arith.constant 25 : i32
      %98 = arith.addi %22, %c25_i32 : i32
      %99 = arith.index_cast %98 : i32 to index
      %100 = memref.load %arg1[%99] : memref<1088xf32, #tpu.memory_space<smem>>
      %c26_i32 = arith.constant 26 : i32
      %101 = arith.addi %22, %c26_i32 : i32
      %102 = arith.index_cast %101 : i32 to index
      %103 = memref.load %arg1[%102] : memref<1088xf32, #tpu.memory_space<smem>>
      %c27_i32 = arith.constant 27 : i32
      %104 = arith.addi %22, %c27_i32 : i32
      %105 = arith.index_cast %104 : i32 to index
      %106 = memref.load %arg1[%105] : memref<1088xf32, #tpu.memory_space<smem>>
      %c28_i32 = arith.constant 28 : i32
      %107 = arith.addi %22, %c28_i32 : i32
      %108 = arith.index_cast %107 : i32 to index
      %109 = memref.load %arg1[%108] : memref<1088xf32, #tpu.memory_space<smem>>
      %c29_i32 = arith.constant 29 : i32
      %110 = arith.addi %22, %c29_i32 : i32
      %111 = arith.index_cast %110 : i32 to index
      %112 = memref.load %arg1[%111] : memref<1088xf32, #tpu.memory_space<smem>>
      %c30_i32 = arith.constant 30 : i32
      %113 = arith.addi %22, %c30_i32 : i32
      %114 = arith.index_cast %113 : i32 to index
      %115 = memref.load %arg1[%114] : memref<1088xf32, #tpu.memory_space<smem>>
      %c31_i32 = arith.constant 31 : i32
      %116 = arith.addi %22, %c31_i32 : i32
      %117 = arith.index_cast %116 : i32 to index
      %118 = memref.load %arg1[%117] : memref<1088xf32, #tpu.memory_space<smem>>
      %c32_i32_14 = arith.constant 32 : i32
      %119 = arith.addi %22, %c32_i32_14 : i32
      %120 = arith.index_cast %119 : i32 to index
      %121 = memref.load %arg1[%120] : memref<1088xf32, #tpu.memory_space<smem>>
      %c33_i32 = arith.constant 33 : i32
      %122 = arith.addi %22, %c33_i32 : i32
      %123 = arith.index_cast %122 : i32 to index
      %124 = memref.load %arg1[%123] : memref<1088xf32, #tpu.memory_space<smem>>
      %125 = vector.broadcast %25 : f32 to vector<8x128xf32>
      %126 = arith.subf %5, %125 : vector<8x128xf32>
      %127 = vector.broadcast %28 : f32 to vector<8x128xf32>
      %128 = arith.subf %7, %127 : vector<8x128xf32>
      %129 = vector.broadcast %31 : f32 to vector<8x128xf32>
      %130 = arith.subf %9, %129 : vector<8x128xf32>
      %131 = vector.broadcast %88 : f32 to vector<8x128xf32>
      %132 = arith.mulf %131, %126 : vector<8x128xf32>
      %133 = vector.broadcast %91 : f32 to vector<8x128xf32>
      %134 = arith.mulf %133, %128 : vector<8x128xf32>
      %135 = arith.addf %132, %134 : vector<8x128xf32>
      %136 = vector.broadcast %94 : f32 to vector<8x128xf32>
      %137 = arith.mulf %136, %130 : vector<8x128xf32>
      %138 = arith.addf %135, %137 : vector<8x128xf32>
      %139 = vector.broadcast %52 : f32 to vector<8x128xf32>
      %140 = arith.mulf %139, %126 : vector<8x128xf32>
      %141 = vector.broadcast %55 : f32 to vector<8x128xf32>
      %142 = arith.mulf %141, %128 : vector<8x128xf32>
      %143 = arith.addf %140, %142 : vector<8x128xf32>
      %144 = vector.broadcast %58 : f32 to vector<8x128xf32>
      %145 = arith.mulf %144, %130 : vector<8x128xf32>
      %146 = arith.addf %143, %145 : vector<8x128xf32>
      %147 = vector.broadcast %115 : f32 to vector<8x128xf32>
      %148 = arith.mulf %146, %147 : vector<8x128xf32>
      %cst_15 = arith.constant 0.000000e+00 : f32
      %cst_16 = arith.constant 1.000000e+00 : f32
      %149 = vector.broadcast %cst_15 : f32 to vector<8x128xf32>
      %150 = arith.maximumf %149, %148 : vector<8x128xf32>
      %151 = vector.broadcast %cst_16 : f32 to vector<8x128xf32>
      %152 = arith.minimumf %151, %150 : vector<8x128xf32>
      %153 = vector.broadcast %52 : f32 to vector<8x128xf32>
      %154 = arith.mulf %153, %152 : vector<8x128xf32>
      %155 = arith.subf %154, %126 : vector<8x128xf32>
      %156 = vector.broadcast %55 : f32 to vector<8x128xf32>
      %157 = arith.mulf %156, %152 : vector<8x128xf32>
      %158 = arith.subf %157, %128 : vector<8x128xf32>
      %159 = vector.broadcast %58 : f32 to vector<8x128xf32>
      %160 = arith.mulf %159, %152 : vector<8x128xf32>
      %161 = arith.subf %160, %130 : vector<8x128xf32>
      %162 = arith.mulf %155, %155 : vector<8x128xf32>
      %163 = arith.mulf %158, %158 : vector<8x128xf32>
      %164 = arith.addf %162, %163 : vector<8x128xf32>
      %165 = arith.mulf %161, %161 : vector<8x128xf32>
      %166 = arith.addf %164, %165 : vector<8x128xf32>
      %167 = vector.broadcast %79 : f32 to vector<8x128xf32>
      %168 = arith.mulf %167, %126 : vector<8x128xf32>
      %169 = vector.broadcast %82 : f32 to vector<8x128xf32>
      %170 = arith.mulf %169, %128 : vector<8x128xf32>
      %171 = arith.addf %168, %170 : vector<8x128xf32>
      %172 = vector.broadcast %85 : f32 to vector<8x128xf32>
      %173 = arith.mulf %172, %130 : vector<8x128xf32>
      %174 = arith.addf %171, %173 : vector<8x128xf32>
      %175 = arith.mulf %174, %174 : vector<8x128xf32>
      %176 = vector.broadcast %124 : f32 to vector<8x128xf32>
      %177 = arith.mulf %175, %176 : vector<8x128xf32>
      %178 = vector.broadcast %34 : f32 to vector<8x128xf32>
      %179 = arith.subf %5, %178 : vector<8x128xf32>
      %180 = vector.broadcast %37 : f32 to vector<8x128xf32>
      %181 = arith.subf %7, %180 : vector<8x128xf32>
      %182 = vector.broadcast %40 : f32 to vector<8x128xf32>
      %183 = arith.subf %9, %182 : vector<8x128xf32>
      %184 = vector.broadcast %97 : f32 to vector<8x128xf32>
      %185 = arith.mulf %184, %179 : vector<8x128xf32>
      %186 = vector.broadcast %100 : f32 to vector<8x128xf32>
      %187 = arith.mulf %186, %181 : vector<8x128xf32>
      %188 = arith.addf %185, %187 : vector<8x128xf32>
      %189 = vector.broadcast %103 : f32 to vector<8x128xf32>
      %190 = arith.mulf %189, %183 : vector<8x128xf32>
      %191 = arith.addf %188, %190 : vector<8x128xf32>
      %192 = vector.broadcast %61 : f32 to vector<8x128xf32>
      %193 = arith.mulf %192, %179 : vector<8x128xf32>
      %194 = vector.broadcast %64 : f32 to vector<8x128xf32>
      %195 = arith.mulf %194, %181 : vector<8x128xf32>
      %196 = arith.addf %193, %195 : vector<8x128xf32>
      %197 = vector.broadcast %67 : f32 to vector<8x128xf32>
      %198 = arith.mulf %197, %183 : vector<8x128xf32>
      %199 = arith.addf %196, %198 : vector<8x128xf32>
      %200 = vector.broadcast %118 : f32 to vector<8x128xf32>
      %201 = arith.mulf %199, %200 : vector<8x128xf32>
      %cst_17 = arith.constant 0.000000e+00 : f32
      %cst_18 = arith.constant 1.000000e+00 : f32
      %202 = vector.broadcast %cst_17 : f32 to vector<8x128xf32>
      %203 = arith.maximumf %202, %201 : vector<8x128xf32>
      %204 = vector.broadcast %cst_18 : f32 to vector<8x128xf32>
      %205 = arith.minimumf %204, %203 : vector<8x128xf32>
      %206 = vector.broadcast %61 : f32 to vector<8x128xf32>
      %207 = arith.mulf %206, %205 : vector<8x128xf32>
      %208 = arith.subf %207, %179 : vector<8x128xf32>
      %209 = vector.broadcast %64 : f32 to vector<8x128xf32>
      %210 = arith.mulf %209, %205 : vector<8x128xf32>
      %211 = arith.subf %210, %181 : vector<8x128xf32>
      %212 = vector.broadcast %67 : f32 to vector<8x128xf32>
      %213 = arith.mulf %212, %205 : vector<8x128xf32>
      %214 = arith.subf %213, %183 : vector<8x128xf32>
      %215 = arith.mulf %208, %208 : vector<8x128xf32>
      %216 = arith.mulf %211, %211 : vector<8x128xf32>
      %217 = arith.addf %215, %216 : vector<8x128xf32>
      %218 = arith.mulf %214, %214 : vector<8x128xf32>
      %219 = arith.addf %217, %218 : vector<8x128xf32>
      %220 = arith.minimumf %166, %219 : vector<8x128xf32>
      %221 = vector.broadcast %43 : f32 to vector<8x128xf32>
      %222 = arith.subf %5, %221 : vector<8x128xf32>
      %223 = vector.broadcast %46 : f32 to vector<8x128xf32>
      %224 = arith.subf %7, %223 : vector<8x128xf32>
      %225 = vector.broadcast %49 : f32 to vector<8x128xf32>
      %226 = arith.subf %9, %225 : vector<8x128xf32>
      %227 = vector.broadcast %106 : f32 to vector<8x128xf32>
      %228 = arith.mulf %227, %222 : vector<8x128xf32>
      %229 = vector.broadcast %109 : f32 to vector<8x128xf32>
      %230 = arith.mulf %229, %224 : vector<8x128xf32>
      %231 = arith.addf %228, %230 : vector<8x128xf32>
      %232 = vector.broadcast %112 : f32 to vector<8x128xf32>
      %233 = arith.mulf %232, %226 : vector<8x128xf32>
      %234 = arith.addf %231, %233 : vector<8x128xf32>
      %235 = vector.broadcast %70 : f32 to vector<8x128xf32>
      %236 = arith.mulf %235, %222 : vector<8x128xf32>
      %237 = vector.broadcast %73 : f32 to vector<8x128xf32>
      %238 = arith.mulf %237, %224 : vector<8x128xf32>
      %239 = arith.addf %236, %238 : vector<8x128xf32>
      %240 = vector.broadcast %76 : f32 to vector<8x128xf32>
      %241 = arith.mulf %240, %226 : vector<8x128xf32>
      %242 = arith.addf %239, %241 : vector<8x128xf32>
      %243 = vector.broadcast %121 : f32 to vector<8x128xf32>
      %244 = arith.mulf %242, %243 : vector<8x128xf32>
      %cst_19 = arith.constant 0.000000e+00 : f32
      %cst_20 = arith.constant 1.000000e+00 : f32
      %245 = vector.broadcast %cst_19 : f32 to vector<8x128xf32>
      %246 = arith.maximumf %245, %244 : vector<8x128xf32>
      %247 = vector.broadcast %cst_20 : f32 to vector<8x128xf32>
      %248 = arith.minimumf %247, %246 : vector<8x128xf32>
      %249 = vector.broadcast %70 : f32 to vector<8x128xf32>
      %250 = arith.mulf %249, %248 : vector<8x128xf32>
      %251 = arith.subf %250, %222 : vector<8x128xf32>
      %252 = vector.broadcast %73 : f32 to vector<8x128xf32>
      %253 = arith.mulf %252, %248 : vector<8x128xf32>
      %254 = arith.subf %253, %224 : vector<8x128xf32>
      %255 = vector.broadcast %76 : f32 to vector<8x128xf32>
      %256 = arith.mulf %255, %248 : vector<8x128xf32>
      %257 = arith.subf %256, %226 : vector<8x128xf32>
      %258 = arith.mulf %251, %251 : vector<8x128xf32>
      %259 = arith.mulf %254, %254 : vector<8x128xf32>
      %260 = arith.addf %258, %259 : vector<8x128xf32>
      %261 = arith.mulf %257, %257 : vector<8x128xf32>
      %262 = arith.addf %260, %261 : vector<8x128xf32>
      %263 = arith.minimumf %220, %262 : vector<8x128xf32>
      %cst_21 = arith.constant 0.000000e+00 : f32
      %264 = vector.broadcast %cst_21 : f32 to vector<8x128xf32>
      %265 = arith.cmpf olt, %138, %264 : vector<8x128xf32>
      %cst_22 = arith.constant 0.000000e+00 : f32
      %266 = vector.broadcast %cst_22 : f32 to vector<8x128xf32>
      %267 = arith.cmpf olt, %191, %266 : vector<8x128xf32>
      %268 = arith.ori %265, %267 : vector<8x128xi1>
      %cst_23 = arith.constant 0.000000e+00 : f32
      %269 = vector.broadcast %cst_23 : f32 to vector<8x128xf32>
      %270 = arith.cmpf olt, %234, %269 : vector<8x128xf32>
      %271 = arith.ori %268, %270 : vector<8x128xi1>
      %272 = arith.select %271, %263, %177 : vector<8x128xi1>, vector<8x128xf32>
      %cst_24 = arith.constant 9.99999993E-9 : f32
      %273 = vector.broadcast %cst_24 : f32 to vector<8x128xf32>
      %274 = arith.maximumf %272, %273 : vector<8x128xf32>
      %275 = math.sqrt %274 : vector<8x128xf32>
      %cst_25 = arith.constant -3.200000e+01 : f32
      %276 = vector.broadcast %cst_25 : f32 to vector<8x128xf32>
      %277 = arith.mulf %276, %275 : vector<8x128xf32>
      %278 = math.exp %277 : vector<8x128xf32>
      %279 = arith.addf %arg7, %278 : vector<8x128xf32>
      scf.yield %279 : vector<8x128xf32>
    }
    %c32_i32_5 = arith.constant 32 : i32
    %cst_6 = arith.constant 3.59663963 : f32
    %13 = vector.broadcast %cst_6 : f32 to vector<8x128xf32>
    %14 = arith.mulf %13, %12 : vector<8x128xf32>
    %cst_7 = arith.constant 9.99999997E-7 : f32
    %15 = vector.broadcast %cst_7 : f32 to vector<8x128xf32>
    %16 = arith.maximumf %14, %15 : vector<8x128xf32>
    %17 = math.log %16 : vector<8x128xf32>
    %cst_8 = arith.constant -3.125000e-02 : f32
    %18 = vector.broadcast %cst_8 : f32 to vector<8x128xf32>
    %19 = arith.mulf %18, %17 : vector<8x128xf32>
    %20 = arith.index_cast %3 : i32 to index
    %c0_9 = arith.constant 0 : index
    %21 = vector.load %arg5[%20, %c0_9] : memref<8x128xf32, #tpu.memory_space<vmem>>, vector<8x128xf32>
    tpu.vector_store %arg5[%20, %c0_9], %19 {strides = array<i32>} : memref<8x128xf32, #tpu.memory_space<vmem>>, vector<8x128xf32>,
    %c1_i32_10 = arith.constant 1 : i32
    return
  }
  func.func @transform_0(%arg0: i32) -> i32 {
    %c0_i32 = arith.constant 0 : i32
    %c0_i32_0 = arith.constant 0 : i32
    return %c0_i32 : i32
  }
  func.func @transform_1(%arg0: i32) -> (i32, i32) {
    %c0_i32 = arith.constant 0 : i32
    %c0_i32_0 = arith.constant 0 : i32
    return %arg0, %c0_i32 : i32, i32
  }
  func.func @transform_2(%arg0: i32) -> (i32, i32) {
    %c0_i32 = arith.constant 0 : i32
    %c0_i32_0 = arith.constant 0 : i32
    return %arg0, %c0_i32 : i32, i32
  }
  func.func @transform_3(%arg0: i32) -> (i32, i32) {
    %c0_i32 = arith.constant 0 : i32
    %c0_i32_0 = arith.constant 0 : i32
    return %arg0, %c0_i32 : i32, i32
  }
  func.func @transform_4(%arg0: i32) -> (i32, i32) {
    %c0_i32 = arith.constant 0 : i32
    %c0_i32_0 = arith.constant 0 : i32
    return %arg0, %c0_i32 : i32, i32
  }
}

</mosaic_0001>

<bundles_post_ra>
// kernel: triangles_forward.1
= control target key start
LH: loop header
LB: loop body
LE: loop exit
PB: predicated region body
PF: predicated region fallthrough
CT: control target
= control target key end

     0   :  { %9 = vsyncpa [#allocation3], 0  ;;  %s608_s0 = inlined_call_operand.vmem [shape: f32[1088], index: 0, kind: input, shape index: {}]   ;;  %s609_s1 = inlined_call_operand.vmem [shape: f32[8,128], index: 1, kind: input, shape index: {}]   ;;  %s610_s2 = inlined_call_operand.vmem [shape: f32[8,128], index: 2, kind: input, shape index: {}]   ;;  %s611_s3 = inlined_call_operand.vmem [shape: f32[8,128], index: 3, kind: input, shape index: {}]   ;;  %s612_s4 = inlined_call_operand.vmem [shape: f32[8,128], index: 4, kind: output, shape index: {}]  }
   0x1   :  { %s16_s17 = sshll.u32 %s608_s0, 4  ;;  %s17_s17 = int_to_ptr.vmem [resolvable:$true] %s16_s17 }
   0x2   :  { %s292_s18 = scalar_lea.vmem %s17_s17, 144  ;;  %s296_s19 = scalar_lea.vmem %s17_s17, 256 }
   0x3   :  { %p293_p0 = scmp.ne.s32.totalorder %s17_s17, %s292_s18  ;;  %p297_p1 = scmp.lt.s32.totalorder %s17_s17, %s17_s17 }
   0x4   :  { %p298_p2 = scmp.lt.s32.totalorder %s296_s19, %s292_s18 }
   0x6   :  { %p299_p3 = por %p298_p2, %p297_p1 }
   0x8   :  { %p300_p4 = pnand %p299_p3, %p293_p0 }
   0xa   :  { %303 = shalt.err (!%p300_p4)
}
   0xb   :  { %s322_s20 = smov [#allocation2]  }
   0xc   :  { %19 = dma.vmem_to_smem %s17_s17, 144, %s322_s20, [#allocation3]  }
   0xd   :  { %312 = dma.done.wait [#allocation3], 144  }
   0xe   :  { %313 = vsyncadd [#allocation3], 4294967152 }
   0xf   :  { %29 = sfence }
  0x10   :  { %v354_v0 = vld [vmem:[%s609_s1] sm:$0xff]  ;;  %v366_v3 = vmov 0.0   ;;  %s368_s26 = smov 0  }
  0x11   :  { %v359_v1 = vld [vmem:[%s610_s2] sm:$0xff] }
  0x12   :  { %v364_v2 = vld [vmem:[%s611_s3] sm:$0xff] }
  0x13 LB: > { %s377_s1 = smul.u32 34, %s320_s26  ;;  %s38_s26 = sadd.s32 1, %s320_s26   ;;  %s320_s26 = sphi %s368_s26, %s38_s26   ;;  %v316_v3 = vphi %v366_v3, %v613_v3  }
  0x14   : > { %p35_p5 = scmp.ge.s32.totalorder %s38_s26, 32  }
  0x15   : > { %s380_s2 = sld [smem:[#allocation2 + %s377_s1]]  ;;  %s42_s3 = sadd.s32 1, %s377_s1 }
  0x16   : > { %s383_s27 = sld [smem:[#allocation2 + %s42_s3]]  ;;  %s44_s28 = sadd.s32 2, %s377_s1 }
  0x17   : > { %s386_s29 = sld [smem:[#allocation2 + %s44_s28]]  ;;  %s46_s30 = sadd.s32 3, %s377_s1 }
  0x18   : > { %s389_s5 = sld [smem:[#allocation2 + %s46_s30]]  ;;  %s48_s6 = sadd.s32 4, %s377_s1 }
  0x19   : > { %s392_s7 = sld [smem:[#allocation2 + %s48_s6]]  ;;  %s50_s8 = sadd.s32 5, %s377_s1 }
  0x1a   : > { %s395_s9 = sld [smem:[#allocation2 + %s50_s8]]  ;;  %s52_s10 = sadd.s32 6, %s377_s1 }
  0x1b   : > { %s398_s11 = sld [smem:[#allocation2 + %s52_s10]]  ;;  %s54_s12 = sadd.s32 7, %s377_s1  ;;  %v108_v4 = vstv %s380_s2 }
  0x1c   : > { %s401_s13 = sld [smem:[#allocation2 + %s54_s12]]  ;;  %s56_s14 = sadd.s32 8, %s377_s1  ;;  %v110_v5 = vstv %s383_s27  ;;  %v449_v9 = vsub.f32 %v354_v0, %v108_v4 }
  0x1d   : > { %s404_s15 = sld [smem:[#allocation2 + %s56_s14]]  ;;  %s58_s16 = sadd.s32 9, %s377_s1  ;;  %v456_v11 = vsub.f32 %v359_v1, %v110_v5  ;;  %v112_v12 = vstv %s386_s29 }
  0x1e   : > { %s407_s17 = sld [smem:[#allocation2 + %s58_s16]]  ;;  %s60_s18 = sadd.s32 10, %s377_s1  ;;  %v156_v6 = vstv %s389_s5  ;;  %v487_v23 = vsub.f32 %v364_v2, %v112_v12 }
  0x1f   : > { %s410_s19 = sld [smem:[#allocation2 + %s60_s18]]  ;;  %s62_s20 = sadd.s32 11, %s377_s1  ;;  %v158_v7 = vstv %s392_s7  ;;  %v460_v13 = vsub.f32 %v354_v0, %v156_v6 }
  0x20   : > { %s413_s21 = sld [smem:[#allocation2 + %s62_s20]]  ;;  %s64_s22 = sadd.s32 12, %s377_s1  ;;  %v463_v14 = vsub.f32 %v359_v1, %v158_v7  ;;  %v160_v17 = vstv %s395_s9 }
  0x21   : > { %s416_s0 = sld [smem:[#allocation2 + %s64_s22]]  ;;  %s66_s23 = sadd.s32 13, %s377_s1  ;;  %v194_v8 = vstv %s398_s11  ;;  %v505_v29 = vsub.f32 %v364_v2, %v160_v17 }
  0x22   : > { %s419_s24 = sld [smem:[#allocation2 + %s66_s23]]  ;;  %s68_s25 = sadd.s32 14, %s377_s1  ;;  %v196_v10 = vstv %s401_s13  ;;  %v472_v18 = vsub.f32 %v354_v0, %v194_v8 }
  0x23   : > { %s422_s3 = sld [smem:[#allocation2 + %s68_s25]]  ;;  %s70_s28 = sadd.s32 15, %s377_s1  ;;  %v480_v21 = vsub.f32 %v359_v1, %v196_v10  ;;  %v198_v22 = vstv %s404_s15 }
  0x24   : > { %s425_s30 = sld [smem:[#allocation2 + %s70_s28]]  ;;  %s72_s6 = sadd.s32 16, %s377_s1  ;;  %v122_v15 = vstv %s407_s17  ;;  %v514_v32 = vsub.f32 %v364_v2, %v198_v22 }
  0x25   : > { %s428_s8 = sld [smem:[#allocation2 + %s72_s6]]  ;;  %s74_s10 = sadd.s32 17, %s377_s1  ;;  %v124_v16 = vstv %s410_s19  ;;  %v123_v26 = vmul.f32 %v122_v15, %v449_v9 }
  0x26   : > { %s431_s12 = sld [smem:[#allocation2 + %s74_s10]]  ;;  %s76_s14 = sadd.s32 18, %s377_s1  ;;  %v125_v27 = vmul.f32 %v124_v16, %v456_v11  ;;  %v127_v28 = vstv %s413_s21 }
  0x27   : > { %s435_s16 = sld [smem:[#allocation2 + %s76_s14]]  ;;  %s78_s18 = sadd.s32 19, %s377_s1  ;;  %v170_v19 = vstv %s416_s0  ;;  %v128_v37 = vmul.f32 %v127_v28, %v487_v23 }
  0x28   : > { %s441_s20 = sld [smem:[#allocation2 + %s78_s18]]  ;;  %s80_s22 = sadd.s32 20, %s377_s1  ;;  %v172_v20 = vstv %s419_s24  ;;  %v171_v30 = vmul.f32 %v170_v19, %v460_v13  ;;  %v126_v41 = vadd.f32 %v125_v27, %v123_v26 }
  0x29   : > { %s445_s23 = sld [smem:[#allocation2 + %s80_s22]]  ;;  %s82_s25 = sadd.s32 21, %s377_s1  ;;  %v173_v31 = vmul.f32 %v172_v20, %v463_v14  ;;  %v175_v33 = vstv %s422_s3 }
  0x2a   : > { %s452_s2 = sld [smem:[#allocation2 + %s82_s25]]  ;;  %s84_s27 = sadd.s32 22, %s377_s1  ;;  %v208_v24 = vstv %s425_s30  ;;  %v176_v44 = vmul.f32 %v175_v33, %v505_v29  ;;  %v129_v55 = vadd.f32 %v128_v37, %v126_v41 }
  0x2b   : > { %s465_s5 = sld [smem:[#allocation2 + %s84_s27]]  ;;  %s86_s7 = sadd.s32 23, %s377_s1  ;;  %v210_v25 = vstv %s428_s8  ;;  %v209_v34 = vmul.f32 %v208_v24, %v472_v18  ;;  %v174_v43 = vadd.f32 %v173_v31, %v171_v30 }
  0x2c   : > { %s474_s29 = sld [smem:[#allocation2 + %s86_s7]]  ;;  %s88_s11 = sadd.s32 24, %s377_s1  ;;  %v211_v35 = vmul.f32 %v210_v25, %v480_v21  ;;  %v213_v36 = vstv %s431_s12 }
  0x2d   : > { %s483_s13 = sld [smem:[#allocation2 + %s88_s11]]  ;;  %s90_s9 = sadd.s32 25, %s377_s1  ;;  %v145_v38 = vstv %s435_s16  ;;  %v214_v45 = vmul.f32 %v213_v36, %v514_v32  ;;  %v177_v58 = vadd.f32 %v176_v44, %v174_v43 }
  0x2e   : > { %s491_s28 = sld [smem:[#allocation2 + %s90_s9]]  ;;  %s92_s6 = sadd.s32 26, %s377_s1  ;;  %v147_v42 = vstv %s441_s20  ;;  %v146_v46 = vmul.f32 %v145_v38, %v449_v9  ;;  %v212_v49 = vadd.f32 %v211_v35, %v209_v34 }
  0x2f   : > { %s501_s15 = sld [smem:[#allocation2 + %s92_s6]]  ;;  %s94_s10 = sadd.s32 27, %s377_s1  ;;  %v148_v52 = vmul.f32 %v147_v42, %v456_v11  ;;  %v150_v53 = vstv %s445_s23 }
  0x30   : > { %s516_s14 = sld [smem:[#allocation2 + %s94_s10]]  ;;  %s96_s18 = sadd.s32 28, %s377_s1  ;;  %v114_v39 = vstv %s452_s2  ;;  %v151_v59 = vmul.f32 %v150_v53, %v487_v23  ;;  %v215_v61 = vadd.f32 %v214_v45, %v212_v49 }
  0x31   : > { %s527_s22 = sld [smem:[#allocation2 + %s96_s18]]  ;;  %s98_s25 = sadd.s32 29, %s377_s1  ;;  %v116_v40 = vstv %s465_s5  ;;  %v115_v50 = vmul.f32 %v114_v39, %v449_v9  ;;  %v149_v5 = vadd.f32 %v148_v52, %v146_v46 }
  0x32   : > { %s534_s27 = sld [smem:[#allocation2 + %s98_s25]]  ;;  %s100_s7 = sadd.s32 30, %s377_s1  ;;  %v117_v51 = vmul.f32 %v116_v40, %v456_v11  ;;  %v119_v54 = vstv %s474_s29 }
  0x33   : > { %s101_s11 = sld [smem:[#allocation2 + %s100_s7]]  ;;  %s102_s9 = sadd.s32 31, %s377_s1  ;;  %v162_v47 = vstv %s483_s13  ;;  %v120_v63 = vmul.f32 %v119_v54, %v487_v23  ;;  %v152_v39 = vadd.f32 %v151_v59, %v149_v5 }
  0x34   : > { %s103_s16 = sld [smem:[#allocation2 + %s102_s9]]  ;;  %s104_s6 = sadd.s32 32, %s377_s1  ;;  %v164_v48 = vstv %s491_s28  ;;  %v163_v56 = vmul.f32 %v162_v47, %v460_v13  ;;  %v118_v62 = vadd.f32 %v117_v51, %v115_v50 }
  0x35   : > { %s105_s20 = sld [smem:[#allocation2 + %s104_s6]]  ;;  %v165_v57 = vmul.f32 %v164_v48, %v463_v14  ;;  %v167_v60 = vstv %s501_s15  ;;  %s106_s23 = sadd.s32 33, %s377_s1 }
  0x36   : > { %v200_v8 = vstv %s516_s14  ;;  %v168_v17 = vmul.f32 %v167_v60, %v505_v29  ;;  %v121_v41 = vadd.f32 %v120_v63, %v118_v62  ;;  %s575_s2 = sld [smem:[#allocation2 + %s106_s23]]  ;;  %v153_v62 = vmul.f32 %v152_v39, %v152_v39 }
  0x37   : > { %v202_v10 = vstv %s527_s22  ;;  %v166_v12 = vadd.f32 %v165_v57, %v163_v56  ;;  %v201_v35 = vmul.f32 %v200_v8, %v472_v18 }
  0x38   : > { %v205_v30 = vstv %s534_s27  ;;  %v203_v37 = vmul.f32 %v202_v10, %v480_v21  ;;  %vm232_vm0 = vcmp.lt.f32.partialorder %v121_v41, 0.0 }
  0x39   : > { %v130_v4 = vstv %s101_s11  ;;  %v169_v42 = vadd.f32 %v168_v17, %v166_v12  ;;  %v206_v44 = vmul.f32 %v205_v30, %v514_v32 }
  0x3a   : > { %v131_v6 = vmul.f32 %v130_v4, %v129_v55  ;;  %v178_v7 = vstv %s103_s16  ;;  %v204_v52 = vadd.f32 %v203_v37, %v201_v35 }
  0x3b   : > { %v179_v22 = vmul.f32 %v178_v7, %v177_v58  ;;  %v216_v26 = vstv %s105_s20  ;;  %vm233_vm1 = vcmp.lt.f32.partialorder %v169_v42, 0.0 }
  0x3c   : > { %v132_v27 = vmax.f32 %v131_v6, 0.0  ;;  %v217_v31 = vmul.f32 %v216_v26, %v215_v61  ;;  %v207_v60 = vadd.f32 %v206_v44, %v204_v52  ;;  %vm234_vm2 = vmor %vm232_vm0, %vm233_vm1 }
  0x3d   : > { %v180_v34 = vmax.f32 %v179_v22, 0.0 }
  0x3e   : > { %v133_v38 = vmin.f32 %v132_v27, 1.0  ;;  %v218_v40 = vmax.f32 %v217_v31, 0.0  ;;  %vm235_vm3 = vcmp.lt.f32.partialorder %v207_v60, 0.0 }
  0x3f   : > { %v181_v43 = vmin.f32 %v180_v34, 1.0  ;;  %vm236_vm4 = vmor %vm234_vm2, %vm235_vm3 }
  0x40   : > { %v134_v45 = vmul.f32 %v133_v38, %v122_v15  ;;  %v136_v46 = vmul.f32 %v133_v38, %v124_v16  ;;  %v138_v47 = vmul.f32 %v133_v38, %v127_v28  ;;  %v219_v48 = vmin.f32 %v218_v40, 1.0 }
  0x41   : > { %v182_v49 = vmul.f32 %v181_v43, %v170_v19  ;;  %v184_v50 = vmul.f32 %v181_v43, %v172_v20  ;;  %v186_v51 = vmul.f32 %v181_v43, %v175_v33 }
  0x42   : > { %v135_v53 = vsub.f32 %v134_v45, %v449_v9  ;;  %v137_v54 = vsub.f32 %v136_v46, %v456_v11  ;;  %v139_v15 = vsub.f32 %v138_v47, %v487_v23  ;;  %v220_v16 = vmul.f32 %v219_v48, %v208_v24 }
  0x43   : > { %v183_v28 = vsub.f32 %v182_v49, %v460_v13  ;;  %v185_v55 = vsub.f32 %v184_v50, %v463_v14  ;;  %v187_v19 = vsub.f32 %v186_v51, %v505_v29  ;;  %v222_v20 = vmul.f32 %v219_v48, %v210_v25 }
  0x44   : > { %v140_v56 = vmul.f32 %v135_v53, %v135_v53  ;;  %v141_v33 = vmul.f32 %v137_v54, %v137_v54  ;;  %v143_v57 = vmul.f32 %v139_v15, %v139_v15  ;;  %v221_v9 = vsub.f32 %v220_v16, %v472_v18 }
  0x45   : > { %v188_v11 = vmul.f32 %v183_v28, %v183_v28  ;;  %v189_v58 = vmul.f32 %v185_v55, %v185_v55  ;;  %v191_v23 = vmul.f32 %v187_v19, %v187_v19  ;;  %v223_v59 = vsub.f32 %v222_v20, %v480_v21 }
  0x46   : > { %v142_v24 = vadd.f32 %v141_v33, %v140_v56  ;;  %v224_v13 = vmul.f32 %v219_v48, %v213_v36  ;;  %v226_v14 = vmul.f32 %v221_v9, %v221_v9  ;;  %v154_v18 = vstv %s575_s2 }
  0x47   : > { %v190_v61 = vadd.f32 %v189_v58, %v188_v11  ;;  %v227_v29 = vmul.f32 %v223_v59, %v223_v59  ;;  %v155_v7 = vmul.f32 %v154_v18, %v153_v62 }
  0x48   : > { %v144_v25 = vadd.f32 %v143_v57, %v142_v24  ;;  %v225_v63 = vsub.f32 %v224_v13, %v514_v32 }
  0x49   : > { %v192_v4 = vadd.f32 %v191_v23, %v190_v61  ;;  %v228_v5 = vadd.f32 %v227_v29, %v226_v14 }
  0x4a   : > { %v229_v6 = vmul.f32 %v225_v63, %v225_v63 }
  0x4b   : > { %v193_v21 = vmin.f32 %v144_v25, %v192_v4 }
  0x4c   : > { %v230_v8 = vadd.f32 %v229_v6, %v228_v5 }
  0x4e   : > { %v231_v36 = vmin.f32 %v193_v21, %v230_v8 }
  0x50   : > { %v237_v10 = vsel %vm236_vm4, %v231_v36, %v155_v7 }
  0x51   : > { %v238_v12 = vmax.f32 %v237_v10, 1e-08 }
  0x53   : > { %286 = vrsqrt.f32 %v238_v12  ;;  %vm241_vm5 = vcmp.eq.f32.partialorder %v238_v12, inf  ;;  %v244_v22 = vand.u32 2147483648, %v238_v12  ;;  %vm243_vm6 = vcmp.eq.f32.partialorder %v238_v12, 0.0 }
  0x5d   : > { %v287_v17 = vpop.eup %286 }
  0x5e   : > { %v240_v26 = vmul.f32 %v287_v17, %v238_v12 }
  0x60   : > { %v242_v32 = vsel %vm241_vm5, %v238_v12, %v240_v26 }
  0x61   : > { %v245_v27 = vsel %vm243_vm6, %v244_v22, %v242_v32 }
  0x62   : > { %v246_v30 = vmul.f32 -32.0, %v245_v27 }
  0x64   : > { %v247_v31 = vmul.f32 1.442695, %v246_v30 }
  0x66   : > { %288 = vpow2.f32 %v247_v31 }
  0x6d   :  { %37 = sbr.rel (!%p35_p5) target bundleno = 19 (0x13), region = 47 }
  0x70   : > { %v289_v34 = vpop.eup %288 }
  0x71   : > { %v249_v35 = vadd.f32 %v316_v3, %v289_v34  }
  0x73   : > { %v613_v3 = vmov %v249_v35  ;;  %v250_v37 = vmul.f32 (%p35_p5), 3.5966396, %v249_v35 }
  0x75   :  { %v251_v38 = vmax.f32 %v250_v37, 1e-06 }
  0x77   :  { %290 = vlog2.f32 %v251_v38 }
  0x81   :  { %v291_v39 = vpop.eup %290 }
  0x82   :  { %v253_v40 = vmul.f32 0.6931472, %v291_v39 }
  0x84   :  { %v254_v41 = vmul.f32 -0.03125, %v253_v40 }
  0x86   :  { %255 = vst [vmem:[%s612_s4] sm:$0xff] %v254_v41 }
  0x87   :  { %260 = vsyncpa [#allocation3], 1 }

</bundles_post_ra>
